<compile_context>
chip_gen: v5e
topology: v5e:2x2
jax: 0.10.0
libtpu: 0.0.40
codegen_flags: <defaults>
</compile_context>

<pallas_src>
import functools

import jax
import jax.numpy as jnp
from jax import lax
from jax.experimental import pallas as pl
from jax.experimental.pallas import tpu as pltpu


# ----------------------------------------------------------------------------
# VMEM budgeting helpers
# ----------------------------------------------------------------------------
def _vmem_capacity_bytes():
    try:
        return int(pltpu.get_tpu_info().vmem_capacity_bytes)
    except Exception:
        return 64 * 1024 * 1024                      # v7x-safe fallback


def _pick_tile(full, step, cap):
    """Largest multiple of `step` dividing `full` that is <= cap, else `full`."""
    best = None
    t = step
    while t <= min(full, cap):
        if full % t == 0:
            best = t
        t += step
    return best if best is not None else full


def _attention_vmem_bytes(tq, T, D, h, itemsize):
    """Approximate per-step VMEM footprint of the attention kernel (bytes)."""
    db = 2                                           # default double-buffering
    pipelined = db * itemsize * (
        tq * T * D                                   # r tile
        + tq * D                                     # q tile
        + 2 * T * D                                  # k + v
        + tq * D                                     # out tile
        + D * D + D                                  # W_r + r_bias
    )
    hp = max(8, h)                                   # sublane padding of head dim
    scratch = itemsize * tq * hp * D                 # qw scratch
    temps = 4 * (tq * hp * T                         # rel_all (f32)
                 + 4 * tq * T                        # scores / probs working set
                 + 4 * tq * D)                       # q_f32 / qb / ctx / misc
    return pipelined + scratch + temps


def _pick_tq(T, D, h, itemsize, vmem_cap):
    """Largest query tile (multiple of 8 dividing T) fitting the VMEM budget."""
    budget = int(vmem_cap * 0.45)
    cands = [t for t in range(8, T + 1, 8) if T % t == 0]
    if not cands:
        return T                                     # small / odd T: one full tile
    best = cands[0]
    for t in cands:
        if _attention_vmem_bytes(t, T, D, h, itemsize) <= budget:
            best = t
    return best


# ----------------------------------------------------------------------------
# Linear projection kernel (x @ w + b), M and N tiled
# ----------------------------------------------------------------------------
def _linear_kernel(x_ref, w_ref, b_ref, o_ref):
    o_ref[...] = (
        jnp.dot(x_ref[...], w_ref[...], preferred_element_type=jnp.float32)
        + b_ref[...].astype(jnp.float32)
    ).astype(o_ref.dtype)


def _pallas_linear(x2d, w, b):
    M, K = x2d.shape
    N = w.shape[1]
    itemsize = jnp.dtype(x2d.dtype).itemsize
    cap = _vmem_capacity_bytes()

    tn = _pick_tile(N, 128, 2048)
    tm = _pick_tile(M, 8, 1024)
    # TODO(synk): add K tiling with a pl.when-gated accumulator for huge d_model.

    est = 2 * itemsize * (tm * K + K * tn + tn + tm * tn) + 8 * tm * tn
    vmem_limit = int(min(cap, max(32 * 1024 * 1024, 2 * est)))

    return pl.pallas_call(
        _linear_kernel,
        out_shape=jax.ShapeDtypeStruct((M, N), x2d.dtype),
        grid=(M // tm, N // tn),
        in_specs=[
            pl.BlockSpec((tm, K), lambda i, j: (i, 0)),
            pl.BlockSpec((K, tn), lambda i, j: (0, j)),
            pl.BlockSpec((1, tn), lambda i, j: (0, j)),
        ],
        out_specs=pl.BlockSpec((tm, tn), lambda i, j: (i, j)),
        compiler_params=pltpu.CompilerParams(
            dimension_semantics=("parallel", "parallel"),
            vmem_limit_bytes=vmem_limit,
        ),
    )(x2d, w, b.reshape(1, N))


# ----------------------------------------------------------------------------
# Relative attention kernel
# ----------------------------------------------------------------------------
def _rel_attention_kernel(q_ref, k_ref, v_ref, r_ref, wr_ref, rb_ref, o_ref,
                          qw_ref, *, scale, h, d_k):
    # One (batch, query-tile) step; the raw r tile is loaded and streamed once.
    q = q_ref[0]                                       # (tq, D) native dtype
    k = k_ref[0]                                       # (T,  D)
    v = v_ref[0]                                       # (T,  D)
    r_t = r_ref[0]                                     # (tq, T, D) native dtype

    q_f32 = q.astype(jnp.float32)
    q_scaled = q_f32 * scale                           # scale folded (qk path)
    qb = (q_f32 + rb_ref[...].astype(jnp.float32)) * scale   # (q + r_bias)*scale

    # Pass 1: folded r-projection coefficients for every head -> qw_ref (tq,h,D).
    for n in range(h):
        cols = slice(n * d_k, (n + 1) * d_k)
        qw_n = lax.dot_general(
            qb[:, cols], wr_ref[:, cols],
            (((1,), (1,)), ((), ())),
            preferred_element_type=jnp.float32)        # (tq, D)
        qw_ref[:, n, :] = qw_n.astype(qw_ref.dtype)

    # One batched matmul over ALL heads: rel_all[i, n, j] = qw[i,n,:] . r_t[i,j,:]
    # (batch over query rows, contract d_model).  r_t is consumed exactly once.
    rel_all = lax.dot_general(
        qw_ref[...], r_t,
        (((2,), (2,)), ((0,), (0,))),
        preferred_element_type=jnp.float32)            # (tq, h, T), T lane-dense

    # NOTE: the r_layer bias term ((q+r_bias).b_r) is constant per softmax row
    # and cancels exactly, so it is not computed.

    # Pass 2: per-head scores / softmax / PV; per-head lane-slice stores.
    for n in range(h):
        cols = slice(n * d_k, (n + 1) * d_k)
        scores = lax.dot_general(
            q_scaled[:, cols].astype(k.dtype), k[:, cols],
            (((1,), (1,)), ((), ())),
            preferred_element_type=jnp.float32)        # (tq, T)
        scores = scores + rel_all[:, n, :]

        # row softmax in f32; approx reciprocal -> EUP slot
        scores = scores - jnp.max(scores, axis=-1, keepdims=True)
        p = jnp.exp(scores)
        p = p * pl.reciprocal(jnp.sum(p, axis=-1, keepdims=True), approx=True)

        ctx = jnp.dot(p.astype(v.dtype), v[:, cols],
                      preferred_element_type=jnp.float32)   # (tq, d_k)
        o_ref[0, :, cols] = ctx.astype(o_ref.dtype)


def _pallas_rel_attention(q, k, v, r4, wr, rb_full, scale, h, d_k):
    # q, k, v: (B, T, D);  r4: (B, T, T, D);  wr: (D, D);  rb_full: (1, D)
    B, T, D = q.shape
    itemsize = jnp.dtype(q.dtype).itemsize
    cap = _vmem_capacity_bytes()
    tq = _pick_tq(T, D, h, itemsize, cap)
    est = _attention_vmem_bytes(tq, T, D, h, itemsize)
    vmem_limit = int(min(cap, max(32 * 1024 * 1024, 2 * est)))

    kernel = functools.partial(_rel_attention_kernel, scale=scale, h=h, d_k=d_k)
    return pl.pallas_call(
        kernel,
        out_shape=jax.ShapeDtypeStruct((B, T, D), q.dtype),
        grid=(B, T // tq),
        in_specs=[
            pl.BlockSpec((1, tq, D), lambda b, i: (b, i, 0)),        # q tile
            pl.BlockSpec((1, T, D), lambda b, i: (b, 0, 0)),         # k (all keys)
            pl.BlockSpec((1, T, D), lambda b, i: (b, 0, 0)),         # v
            pl.BlockSpec((1, tq, T, D), lambda b, i: (b, i, 0, 0)),  # raw r tile
            pl.BlockSpec((D, D), lambda b, i: (0, 0)),               # W_r
            pl.BlockSpec((1, D), lambda b, i: (0, 0)),               # r_bias (flat)
        ],
        out_specs=pl.BlockSpec((1, tq, D), lambda b, i: (b, i, 0)),  # lane-dense out
        scratch_shapes=[pltpu.VMEM((tq, h, D), r4.dtype)],           # qw buffer
        compiler_params=pltpu.CompilerParams(
            dimension_semantics=("parallel", "parallel"),
            vmem_limit_bytes=vmem_limit,
        ),
    )(q, k, v, r4, wr, rb_full)


# ----------------------------------------------------------------------------
# Module wrapper (parameter setup + cheap reshapes = plain-JAX glue)
# ----------------------------------------------------------------------------
def init_rel_attention_params(key, h, d_model):
    d_k = d_model // h
    keys = jax.random.split(key, 11)
    s = 0.05
    return dict(
        h=h,
        d_model=d_model,
        wq=jax.random.normal(keys[0], (d_model, d_model), jnp.float32) * s,
        bq=jax.random.normal(keys[1], (d_model,), jnp.float32) * s,
        wk=jax.random.normal(keys[2], (d_model, d_model), jnp.float32) * s,
        bk=jax.random.normal(keys[3], (d_model,), jnp.float32) * s,
        wv=jax.random.normal(keys[4], (d_model, d_model), jnp.float32) * s,
        bv=jax.random.normal(keys[5], (d_model,), jnp.float32) * s,
        wr=jax.random.normal(keys[6], (d_model, d_model), jnp.float32) * s,
        br=jax.random.normal(keys[7], (d_model,), jnp.float32) * s,
        wo=jax.random.normal(keys[8], (d_model, d_model), jnp.float32) * s,
        bo=jax.random.normal(keys[9], (d_model,), jnp.float32) * s,
        r_bias=jax.random.normal(keys[10], (1, h, 1, d_model // h), jnp.float32) * s,
    )


def rel_attention_forward(params, query, key, value, r):
    B, T, D = query.shape
    h = params["h"]
    d_k = D // h
    scale = 1.0 / (d_k ** 0.5)

    if (query is key) and (key is value):
        # self-attention: fused q/k/v projection (activation read from HBM once)
        w_qkv = jnp.concatenate([params["wq"], params["wk"], params["wv"]], axis=1)
        b_qkv = jnp.concatenate([params["bq"], params["bk"], params["bv"]], axis=0)
        qkv = _pallas_linear(query.reshape(B * T, D), w_qkv, b_qkv)       # (BT, 3D)
        q = qkv[:, :D].reshape(B, T, D)
        k = qkv[:, D:2 * D].reshape(B, T, D)
        v = qkv[:, 2 * D:].reshape(B, T, D)
    else:
        q = _pallas_linear(query.reshape(B * T, D), params["wq"], params["bq"]).reshape(B, T, D)
        k = _pallas_linear(key.reshape(B * T, D), params["wk"], params["bk"]).reshape(B, T, D)
        v = _pallas_linear(value.reshape(B * T, D), params["wv"], params["bv"]).reshape(B, T, D)

    # raw relative embeddings; the r-projection is folded into the attention
    # kernel, so no (B, h, T, T, d_k) r_proj is ever materialized or transposed.
    r4 = r.reshape(B, T, T, D)
    rb_full = params["r_bias"].reshape(1, h * d_k)                        # (1, D)

    ctx = _pallas_rel_attention(q, k, v, r4, params["wr"], rb_full, scale, h, d_k)

    return _pallas_linear(ctx.reshape(B * T, D), params["wo"], params["bo"]).reshape(B, T, D)


# pure-JAX reference (mirrors the PyTorch forward, eval-mode dropout)
def rel_attention_reference(params, query, key, value, r):
    B, T, D = query.shape
    h = params["h"]
    d_k = D // h
    scale = 1.0 / (d_k ** 0.5)

    def lin(x, w, b):
        return x @ w + b

    q = lin(query, params["wq"], params["bq"]).reshape(B, T, h, d_k).transpose(0, 2, 1, 3)
    k = lin(key, params["wk"], params["bk"]).reshape(B, T, h, d_k).transpose(0, 2, 1, 3)
    v = lin(value, params["wv"], params["bv"]).reshape(B, T, h, d_k).transpose(0, 2, 1, 3)
    rp = lin(r, params["wr"], params["br"]).reshape(B, T, T, h, d_k).transpose(0, 3, 1, 2, 4)

    scores = jnp.einsum("bnid,bnjd->bnij", q, k)
    rb = params["r_bias"]                                   # (1, h, 1, d_k)
    scores = scores + jnp.einsum("bnid,bnijd->bnij", q + rb, rp)
    scores = scores * scale
    p = jax.nn.softmax(scores, axis=-1)
    ctx = jnp.einsum("bnij,bnjd->bnid", p, v)
    x = ctx.transpose(0, 2, 1, 3).reshape(B, T, D)
    return lin(x, params["wo"], params["bo"])


if __name__ == "__main__":
    B, T, h, d_model = 2, 8, 4, 32

    root = jax.random.PRNGKey(0)
    kp, kx, kq, kk, kv, kr = jax.random.split(root, 6)

    params = init_rel_attention_params(kp, h, d_model)
    x = jax.random.normal(kx, (B, T, d_model), jnp.float32)
    r = jax.random.normal(kr, (B, T * T, d_model), jnp.float32)

    # self-attention path (query is key is value): exercises the fused QKV matmul
    out = jax.block_until_ready(rel_attention_forward(params, x, x, x, r))
    ref = rel_attention_reference(params, x, x, x, r)
    assert out.shape == (B, T, d_model)
    assert jnp.allclose(out, ref, atol=2e-3, rtol=2e-3), "mismatch (self-attn path)"

    # distinct q/k/v path (separate projections)
    query = jax.random.normal(kq, (B, T, d_model), jnp.float32)
    key = jax.random.normal(kk, (B, T, d_model), jnp.float32)
    value = jax.random.normal(kv, (B, T, d_model), jnp.float32)
    out2 = jax.block_until_ready(rel_attention_forward(params, query, key, value, r))
    ref2 = rel_attention_reference(params, query, key, value, r)
    assert jnp.allclose(out2, ref2, atol=2e-3, rtol=2e-3), "mismatch (cross-attn path)"

    print("KERNEL_OK")
</pallas_src>

<mosaic_0001>
module attributes {stable_mosaic.version = 11 : i64} {
  func.func @_linear_kernel(%arg0: i32, %arg1: i32, %arg2: memref<16x32xf32, #tpu.memory_space<vmem>>, %arg3: memref<32x96xf32, #tpu.memory_space<vmem>>, %arg4: memref<1x96xf32, #tpu.memory_space<vmem>>, %arg5: memref<16x96xf32, #tpu.memory_space<vmem>>) attributes {dimension_semantics = [#tpu.dimension_semantics<parallel>, #tpu.dimension_semantics<parallel>], iteration_bounds = array<i64: 1, 1>, scalar_prefetch = 0 : i64, scratch_operands = 0 : i64, tpu.core_type = #tpu.core_type<tc>, window_params = [{transform_indices = @transform_0, window_bounds = array<i64: 16, 32>}, {transform_indices = @transform_1, window_bounds = array<i64: 32, 96>}, {transform_indices = @transform_2, window_bounds = array<i64: 1, 96>}, {transform_indices = @transform_3, window_bounds = array<i64: 16, 96>}]} {
    %c0 = arith.constant 0 : index
    %c0_0 = arith.constant 0 : index
    %0 = vector.load %arg2[%c0, %c0_0] : memref<16x32xf32, #tpu.memory_space<vmem>>, vector<16x32xf32>
    %c0_1 = arith.constant 0 : index
    %c0_2 = arith.constant 0 : index
    %1 = vector.load %arg3[%c0_1, %c0_2] : memref<32x96xf32, #tpu.memory_space<vmem>>, vector<32x96xf32>
    %cst = arith.constant dense<0.000000e+00> : vector<16x96xf32>
    %2 = tpu.matmul %0, %1, %cst {dimension_numbers = #tpu.dot_dimension_numbers<[1], [0], [0], [1], [0, 0, 1, 1], [], []>} : vector<16x32xf32>, vector<32x96xf32>, vector<16x96xf32> -> vector<16x96xf32>
    %c0_3 = arith.constant 0 : index
    %c0_4 = arith.constant 0 : index
    %3 = vector.load %arg4[%c0_3, %c0_4] : memref<1x96xf32, #tpu.memory_space<vmem>>, vector<1x96xf32>
    %4 = vector.broadcast %3 : vector<1x96xf32> to vector<16x96xf32>
    %5 = arith.addf %2, %4 : vector<16x96xf32>
    %c0_5 = arith.constant 0 : index
    %c0_6 = arith.constant 0 : index
    %6 = vector.load %arg5[%c0_5, %c0_6] : memref<16x96xf32, #tpu.memory_space<vmem>>, vector<16x96xf32>
    tpu.vector_store %arg5[%c0_5, %c0_6], %5 {strides = array<i32>} : memref<16x96xf32, #tpu.memory_space<vmem>>, vector<16x96xf32>,
    return
  }
  func.func @transform_0(%arg0: i32, %arg1: i32) -> (i32, i32) {
    %c0_i32 = arith.constant 0 : i32
    %c0_i32_0 = arith.constant 0 : i32
    return %arg0, %c0_i32 : i32, i32
  }
  func.func @transform_1(%arg0: i32, %arg1: i32) -> (i32, i32) {
    %c0_i32 = arith.constant 0 : i32
    %c0_i32_0 = arith.constant 0 : i32
    return %c0_i32, %arg1 : i32, i32
  }
  func.func @transform_2(%arg0: i32, %arg1: i32) -> (i32, i32) {
    %c0_i32 = arith.constant 0 : i32
    %c0_i32_0 = arith.constant 0 : i32
    return %c0_i32, %arg1 : i32, i32
  }
  func.func @transform_3(%arg0: i32, %arg1: i32) -> (i32, i32) {
    %c0_i32 = arith.constant 0 : i32
    return %arg0, %arg1 : i32, i32
  }
}

</mosaic_0001>

<bundles_post_ra>
// kernel: tpu_custom_call.1
= control target key start
LH: loop header
LB: loop body
LE: loop exit
PB: predicated region body
PF: predicated region fallthrough
CT: control target
= control target key end

     0   :  { %8 = vsyncpa [#allocation3], 0  ;;  %s246_s0 = inlined_call_operand.hbm [shape: f32[16,32], index: 0, kind: input, shape index: {}]   ;;  %s247_s1 = inlined_call_operand.hbm [shape: f32[32,96], index: 1, kind: input, shape index: {}]   ;;  %s248_s2 = inlined_call_operand.vmem [shape: f32[1,96], index: 2, kind: input, shape index: {}]   ;;  %s249_s3 = inlined_call_operand.hbm [shape: f32[16,96], index: 3, kind: output, shape index: {}]  }
   0x1   :  { %9 = vsyncpa [#allocation6], 0 }
   0x2   :  { %10 = vsyncpa [#allocation4], 0  ;;  %s15_s14 = sshll.u32 %s246_s0, 4  ;;  %s200_s15 = smov [#allocation2]   ;;  %s16_s14 = int_to_ptr.hbm [resolvable:$true] %s15_s14 }
   0x3   :  { %s17_s16 = sshll.u32 %s200_s15, 4  ;;  %s28_s19 = sshll.u32 %s247_s1, 4  ;;  %s18_s16 = int_to_ptr.vmem [resolvable:$true] %s17_s16  ;;  %s29_s19 = int_to_ptr.hbm [resolvable:$true] %s28_s19 }
   0x4   :  { %s201_s20 = smov 128   ;;  %s202_s21 = smov 8  }
   0x5   :  { %23 = dma.hbm_to_vmem [thread:$0]  %s16_s14, 256, %s18_s16, [#allocation3], %s201_s20, %s201_s20, %s202_s21  }
   0x6   :  { %s203_s22 = smov [#allocation5]  }
   0x7   :  { %s30_s23 = sshll.u32 %s203_s22, 4  ;;  %s31_s23 = int_to_ptr.vmem [resolvable:$true] %s30_s23 }
   0x8   :  { %36 = dma.hbm_to_vmem [thread:$0]  %s29_s19, 512, %s31_s23, [#allocation6], %s201_s20, %s201_s20, %s202_s21  }
   0x9   :  { %194 = dma.done.wait [#allocation3], 256  }
   0xa   :  { %195 = vsyncadd [#allocation3], 4294967040 }
   0xb   :  { %196 = dma.done.wait [#allocation6], 512  }
   0xc   :  { %197 = vsyncadd [#allocation6], 4294966784  ;;  %v52_v0 = vld [vmem:[#allocation5 + $0x18] sm:$0xff]  ;;  %v51_v1 = vld [vmem:[#allocation5 + $0x10] sm:$0xff]  ;;  %vm57_vm0 = vcmask 261120   ;;  %s204_s24 = smov [#allocation7]  }
   0xd   :  { %76 = vmatpush.msra.mxu0 %v52_v0  ;;  %112 = vmatpush.msra.mxu1 %v52_v0  ;;  %v50_v2 = vld [vmem:[#allocation5 + $0x8] sm:$0xff]  ;;  %v49_v3 = vld [vmem:[#allocation5] sm:$0xff]  ;;  %v47_v4 = vld [vmem:[#allocation2] sm:$0xff]  ;;  %s94_s25 = sshll.u32 %s204_s24, 4  ;;  %s96_s28 = sshll.u32 %s249_s3, 4  ;;  %vm87_vm1 = vcmask 785408   ;;  %s95_s25 = int_to_ptr.vmem [resolvable:$true] %s94_s25  ;;  %s97_s28 = int_to_ptr.hbm [resolvable:$true] %s96_s28 }
   0xe   :  { %v48_v5 = vld [vmem:[#allocation2 + $0x8] sm:$0xff]  ;;  %v121_v6 = vld [vmem:[%s248_s2] ss:$0 sm:$0xff] }
   0xf   :  { %77 = vmatpush.msra.mxu0 %v51_v1  ;;  %113 = vmatpush.msra.mxu1 %v51_v1 }
  0x11   :  { %78 = vmatpush.msra.mxu0 %v50_v2  ;;  %114 = vmatpush.msra.mxu1 %v50_v2 }
  0x13   :  { %79 = vmatpush.msra.mxu0 %v49_v3  ;;  %115 = vmatpush.msra.mxu1 %v49_v3 }
  0x14   :  { %110 = vmatmul.msk.f32.vlgmr.msra.gmra.mxu0 %vm57_vm0, %v47_v4  ;;  %111 = vmatmul.msk.f32.vlgmr.msra.gmra.mxu1 %vm57_vm0, %v48_v5 }
  0x91   :  { %v81_v7 = vpop.f32.mrf.mxu0  ;;  %v84_v8 = vpop.f32.mrf.mxu1 }
  0x92   :  { %v82_v9 = vadd.f32 %v121_v6, %v81_v7  ;;  %v85_v10 = vadd.f32 %v121_v6, %v84_v8 }
  0x94   :  { %88 = vst.msk [vmem:[#allocation7] sm:$0xff] %vm87_vm1, %v82_v9 }
  0x95   :  { %89 = vst.msk [vmem:[#allocation7 + $0x8] sm:$0xff] %vm87_vm1, %v85_v10 }
  0x96   :  { %102 = dma.vmem_to_hbm [thread:$0]  %s95_s25, 256, %s97_s28, [#allocation4], %s201_s20, %s201_s20, %s202_s21  }
  0x97   :  { %198 = dma.done.wait [#allocation4], 256  }
  0x98   :  { %199 = vsyncadd [#allocation4], 4294967040 }
  0x99   :  { %107 = vsyncpa [#allocation3], 1 }
  0x9a   :  { %108 = vsyncpa [#allocation6], 1 }
  0x9b   :  { %109 = vsyncpa [#allocation4], 1 }

</bundles_post_ra>
